<compile_context>
chip_gen: v5e
topology: v5e:2x2
jax: 0.10.0
libtpu: 0.0.40
codegen_flags: <defaults>
</compile_context>

<pallas_src>
import functools

import jax
import jax.numpy as jnp
from jax import lax
from jax.experimental import pallas as pl
from jax.experimental.pallas import tpu as pltpu


def _round_up(x, m):
    return (x + m - 1) // m * m


def _supcon_kernel(feat_row_ref, feat_col_ref, lab_row_ref, lab_col_ref,
                   loss_ref, single_ref,
                   s_exp, s_ml, m_sum,
                   *, inv_temp, b_actual, padded):
    i = pl.program_id(0)
    k = pl.program_id(1)
    nk = pl.num_programs(1)

    @pl.when(k == 0)
    def _init():
        s_exp[...] = jnp.zeros_like(s_exp)
        s_ml[...] = jnp.zeros_like(s_ml)
        m_sum[...] = jnp.zeros_like(m_sum)

    fr = feat_row_ref[...]                      # (tq, D), original dtype
    fc = feat_col_ref[...]                      # (tk, D), original dtype
    tq = fr.shape[0]
    tk = fc.shape[0]

    # MXU contraction over D of both operands (no explicit transpose/relayout).
    logits = lax.dot_general(
        fr, fc,
        dimension_numbers=(((1,), (1,)), ((), ())),
        preferred_element_type=jnp.float32,
    ) * inv_temp                                # (tq, tk) f32

    equal = lab_row_ref[...] == lab_col_ref[...]  # (tq, tk) bool, broadcast compare

    if padded:
        col_idx = k * tk + lax.broadcasted_iota(jnp.int32, (1, tk), 1)
        col_valid = col_idx < b_actual          # (1, tk) bool
    else:
        col_valid = None

    def _accumulate(apply_diag_mask):
        if apply_diag_mask:
            rr = lax.broadcasted_iota(jnp.int32, (tq, tk), 0)
            cc = lax.broadcasted_iota(jnp.int32, (tq, tk), 1)
            keep = rr != cc                     # zero the self-contrast diagonal
        else:
            keep = None

        mvalid = equal
        evalid = keep
        if keep is not None:
            mvalid = jnp.logical_and(mvalid, keep)
        if col_valid is not None:
            mvalid = jnp.logical_and(mvalid, col_valid)
            evalid = col_valid if evalid is None else jnp.logical_and(evalid, col_valid)

        mask_t = mvalid.astype(jnp.float32)     # (tq, tk)
        e = jnp.exp(logits)                     # EUP
        if evalid is not None:
            e = jnp.where(evalid, e, 0.0)

        s_exp[...] += jnp.sum(e, axis=1, keepdims=True)
        s_ml[...] += jnp.sum(mask_t * logits, axis=1, keepdims=True)
        m_sum[...] += jnp.sum(mask_t, axis=1, keepdims=True)

    @pl.when(i == k)
    def _diag_tile():
        _accumulate(True)

    @pl.when(i != k)
    def _offdiag_tile():
        _accumulate(False)

    @pl.when(k == nk - 1)
    def _finalize():
        m = m_sum[...]                          # (tq, 1)
        single = (m == 0.0).astype(jnp.float32)
        # sum_j mask*(logits - log(S_exp)) == S_ml - M*log(S_exp)
        mlp = (s_ml[...] - m * jnp.log(s_exp[...])) / (m + single)
        loss_ref[...] = -mlp * (1.0 - single)
        single_ref[...] = single


def supcon_loss_clear2(features, labels, temperature=0.07):
    """features: [B, D] float; labels: [B] int. Returns scalar f32 loss."""
    B, D = features.shape

    # Keep the matmul operand dtype (bf16 stays bf16 on the MXU); only guard
    # against unsupported dtypes.
    if features.dtype not in (jnp.float32, jnp.bfloat16, jnp.float16):
        features = features.astype(jnp.float32)
    labels = labels.astype(jnp.int32)

    # Tile size: 128-aligned for large B (MXU/lane friendly on v5e/v6e/v7x),
    # otherwise the whole (8-padded) batch in a single tile.
    blk = 128 if B >= 128 else _round_up(B, 8)
    B_pad = _round_up(B, blk)
    padded = B_pad != B

    feats = features
    if padded:
        feats = jnp.pad(feats, ((0, B_pad - B), (0, 0)))
        labels = jnp.pad(labels, (0, B_pad - B), constant_values=-1)

    # Hoist the label "transpose" out of the kernel: rows on sublanes, cols on lanes.
    lab_row = labels.reshape(B_pad, 1)
    lab_col = labels.reshape(1, B_pad)

    grid = (B_pad // blk, B_pad // blk)

    kernel = functools.partial(
        _supcon_kernel,
        inv_temp=float(1.0 / temperature),
        b_actual=B,
        padded=padded,
    )

    loss_vec, single_vec = pl.pallas_call(
        kernel,
        out_shape=(
            jax.ShapeDtypeStruct((B_pad, 1), jnp.float32),
            jax.ShapeDtypeStruct((B_pad, 1), jnp.float32),
        ),
        grid_spec=pltpu.PrefetchScalarGridSpec(
            num_scalar_prefetch=0,
            grid=grid,
            in_specs=[
                pl.BlockSpec((blk, D), lambda i, k: (i, 0)),   # row feature tile
                pl.BlockSpec((blk, D), lambda i, k: (k, 0)),   # col feature tile
                pl.BlockSpec((blk, 1), lambda i, k: (i, 0)),   # row labels
                pl.BlockSpec((1, blk), lambda i, k: (0, k)),   # col labels
            ],
            out_specs=[
                pl.BlockSpec((blk, 1), lambda i, k: (i, 0)),   # per-row loss
                pl.BlockSpec((blk, 1), lambda i, k: (i, 0)),   # per-row singleton flag
            ],
            scratch_shapes=[
                pltpu.VMEM((blk, 1), jnp.float32),             # S_exp
                pltpu.VMEM((blk, 1), jnp.float32),             # S_ml
                pltpu.VMEM((blk, 1), jnp.float32),             # M
            ],
        ),
        compiler_params=pltpu.CompilerParams(
            dimension_semantics=("parallel", "arbitrary")),
    )(feats, feats, lab_row, lab_col)

    # Tiny final reduction (and removal of padded rows) in plain JAX.
    loss_vec = loss_vec[:B, 0]
    single_vec = single_vec[:B, 0]
    return jnp.sum(loss_vec) / (jnp.float32(B) - jnp.sum(single_vec))


def _reference(features, labels, temperature=0.07):
    """Pure-JAX reference mirroring the PyTorch module exactly."""
    B = features.shape[0]
    lab = labels.reshape(-1, 1)
    mask = (lab == lab.T).astype(jnp.float32)
    logits = jnp.matmul(features, features.T) / temperature
    logits_mask = 1.0 - jnp.eye(B, dtype=jnp.float32)
    mask = mask * logits_mask
    single = (mask.sum(1) == 0).astype(jnp.float32)
    exp_logits = jnp.exp(logits) * logits_mask
    log_prob = logits - jnp.log(exp_logits.sum(1, keepdims=True))
    mean_log_prob_pos = (mask * log_prob).sum(1) / (mask.sum(1) + single)
    loss = -mean_log_prob_pos * (1.0 - single)
    return loss.sum() / (B - single.sum())


if __name__ == "__main__":
    key = jax.random.PRNGKey(0)

    # Small test: single tile, grid (1, 1). Includes a singleton class (label 4).
    B, D = 8, 32
    features = jax.random.normal(key, (B, D), dtype=jnp.float32)
    features = features / jnp.linalg.norm(features, axis=1, keepdims=True)
    labels = jnp.array([0, 0, 1, 1, 2, 2, 3, 4], dtype=jnp.int32)

    loss = jax.block_until_ready(supcon_loss_clear2(features, labels, 0.07))
    ref = _reference(features, labels, 0.07)
    assert jnp.allclose(loss, ref, atol=1e-4, rtol=1e-4), (loss, ref)

    # Exercise the tiled + padded path: B=160 -> padded to 256, grid (2, 2).
    k2 = jax.random.PRNGKey(1)
    B2, D2 = 160, 32
    f2 = jax.random.normal(k2, (B2, D2), dtype=jnp.float32)
    f2 = f2 / jnp.linalg.norm(f2, axis=1, keepdims=True)
    l2 = jnp.arange(B2, dtype=jnp.int32) % 5
    loss2 = jax.block_until_ready(supcon_loss_clear2(f2, l2, 0.07))
    ref2 = _reference(f2, l2, 0.07)
    assert jnp.allclose(loss2, ref2, atol=1e-3, rtol=1e-3), (loss2, ref2)

    print("KERNEL_OK")
</pallas_src>

<mosaic_0001>
module attributes {stable_mosaic.version = 11 : i64} {
  func.func @_supcon_kernel(%arg0: i32, %arg1: i32, %arg2: memref<8x32xf32, #tpu.memory_space<vmem>>, %arg3: memref<8x32xf32, #tpu.memory_space<vmem>>, %arg4: memref<8x1xi32, #tpu.memory_space<vmem>>, %arg5: memref<1x8xi32, #tpu.memory_space<vmem>>, %arg6: memref<8x1xf32, #tpu.memory_space<vmem>>, %arg7: memref<8x1xf32, #tpu.memory_space<vmem>>, %arg8: memref<8x1xf32, #tpu.memory_space<vmem>>, %arg9: memref<8x1xf32, #tpu.memory_space<vmem>>, %arg10: memref<8x1xf32, #tpu.memory_space<vmem>>) attributes {dimension_semantics = [#tpu.dimension_semantics<parallel>, #tpu.dimension_semantics<arbitrary>], iteration_bounds = array<i64: 1, 1>, scalar_prefetch = 0 : i64, scratch_operands = 3 : i64, tpu.core_type = #tpu.core_type<tc>, window_params = [{transform_indices = @transform_0, window_bounds = array<i64: 8, 32>}, {transform_indices = @transform_1, window_bounds = array<i64: 8, 32>}, {transform_indices = @transform_2, window_bounds = array<i64: 8, 1>}, {transform_indices = @transform_3, window_bounds = array<i64: 1, 8>}, {transform_indices = @transform_4, window_bounds = array<i64: 8, 1>}, {transform_indices = @transform_5, window_bounds = array<i64: 8, 1>}]} {
    %c0_i32 = arith.constant 0 : i32
    %0 = arith.cmpi eq, %arg1, %c0_i32 : i32
    %1 = arith.extui %0 : i1 to i32
    %c0_i32_0 = arith.constant 0 : i32
    %2 = arith.cmpi ne, %1, %c0_i32_0 : i32
    scf.if %2 {
      %cst_13 = arith.constant 0.000000e+00 : f32
      %22 = vector.broadcast %cst_13 : f32 to vector<8x1xf32>
      %c0_14 = arith.constant 0 : index
      %c0_15 = arith.constant 0 : index
      %23 = vector.load %arg8[%c0_14, %c0_15] : memref<8x1xf32, #tpu.memory_space<vmem>>, vector<8x1xf32>
      tpu.vector_store %arg8[%c0_14, %c0_15], %22 {strides = array<i32>} : memref<8x1xf32, #tpu.memory_space<vmem>>, vector<8x1xf32>,
      %cst_16 = arith.constant 0.000000e+00 : f32
      %24 = vector.broadcast %cst_16 : f32 to vector<8x1xf32>
      %c0_17 = arith.constant 0 : index
      %c0_18 = arith.constant 0 : index
      %25 = vector.load %arg9[%c0_17, %c0_18] : memref<8x1xf32, #tpu.memory_space<vmem>>, vector<8x1xf32>
      tpu.vector_store %arg9[%c0_17, %c0_18], %24 {strides = array<i32>} : memref<8x1xf32, #tpu.memory_space<vmem>>, vector<8x1xf32>,
      %cst_19 = arith.constant 0.000000e+00 : f32
      %26 = vector.broadcast %cst_19 : f32 to vector<8x1xf32>
      %c0_20 = arith.constant 0 : index
      %c0_21 = arith.constant 0 : index
      %27 = vector.load %arg10[%c0_20, %c0_21] : memref<8x1xf32, #tpu.memory_space<vmem>>, vector<8x1xf32>
      tpu.vector_store %arg10[%c0_20, %c0_21], %26 {strides = array<i32>} : memref<8x1xf32, #tpu.memory_space<vmem>>, vector<8x1xf32>,
    } else {
    }
    %c0 = arith.constant 0 : index
    %c0_1 = arith.constant 0 : index
    %3 = vector.load %arg2[%c0, %c0_1] : memref<8x32xf32, #tpu.memory_space<vmem>>, vector<8x32xf32>
    %c0_2 = arith.constant 0 : index
    %c0_3 = arith.constant 0 : index
    %4 = vector.load %arg3[%c0_2, %c0_3] : memref<8x32xf32, #tpu.memory_space<vmem>>, vector<8x32xf32>
    %cst = arith.constant dense<0.000000e+00> : vector<8x8xf32>
    %5 = tpu.matmul %3, %4, %cst {dimension_numbers = #tpu.dot_dimension_numbers<[1], [1], [0], [0], [0, 0, 1, 0], [], []>} : vector<8x32xf32>, vector<8x32xf32>, vector<8x8xf32> -> vector<8x8xf32>
    %cst_4 = arith.constant 14.2857141 : f32
    %6 = vector.broadcast %cst_4 : f32 to vector<8x8xf32>
    %7 = arith.mulf %5, %6 : vector<8x8xf32>
    %c0_5 = arith.constant 0 : index
    %c0_6 = arith.constant 0 : index
    %8 = vector.load %arg4[%c0_5, %c0_6] : memref<8x1xi32, #tpu.memory_space<vmem>>, vector<8x1xi32>
    %c0_7 = arith.constant 0 : index
    %c0_8 = arith.constant 0 : index
    %9 = vector.load %arg5[%c0_7, %c0_8] : memref<1x8xi32, #tpu.memory_space<vmem>>, vector<1x8xi32>
    %10 = vector.broadcast %8 : vector<8x1xi32> to vector<8x8xi32>
    %11 = vector.broadcast %9 : vector<1x8xi32> to vector<8x8xi32>
    %12 = arith.cmpi eq, %10, %11 : vector<8x8xi32>
    %13 = arith.cmpi eq, %arg0, %arg1 : i32
    %14 = arith.extui %13 : i1 to i32
    %c0_i32_9 = arith.constant 0 : i32
    %15 = arith.cmpi ne, %14, %c0_i32_9 : i32
    scf.if %15 {
      %22 = tpu.iota {dimensions = array<i32: 0>} : vector<8x8xi32>
      %23 = tpu.iota {dimensions = array<i32: 1>} : vector<8x8xi32>
      %24 = arith.cmpi ne, %22, %23 : vector<8x8xi32>
      %25 = arith.andi %12, %24 : vector<8x8xi1>
      %26 = arith.extui %25 : vector<8x8xi1> to vector<8x8xi32>
      %27 = arith.sitofp %26 : vector<8x8xi32> to vector<8x8xf32>
      %28 = math.exp %7 : vector<8x8xf32>
      %cst_13 = arith.constant 0.000000e+00 : f32
      %29 = vector.broadcast %cst_13 : f32 to vector<8x8xf32>
      %30 = arith.select %24, %28, %29 : vector<8x8xi1>, vector<8x8xf32>
      %c0_14 = arith.constant 0 : index
      %c0_15 = arith.constant 0 : index
      %31 = vector.load %arg8[%c0_14, %c0_15] : memref<8x1xf32, #tpu.memory_space<vmem>>, vector<8x1xf32>
      %cst_16 = arith.constant dense<0.000000e+00> : vector<8xf32>
      %32 = vector.multi_reduction <add>, %30, %cst_16 [1] : vector<8x8xf32> to vector<8xf32>
      %33 = vector.shape_cast %32 : vector<8xf32> to vector<8x1xf32>
      %34 = arith.addf %31, %33 : vector<8x1xf32>
      %c0_17 = arith.constant 0 : index
      %c0_18 = arith.constant 0 : index
      %35 = vector.load %arg8[%c0_17, %c0_18] : memref<8x1xf32, #tpu.memory_space<vmem>>, vector<8x1xf32>
      tpu.vector_store %arg8[%c0_17, %c0_18], %34 {strides = array<i32>} : memref<8x1xf32, #tpu.memory_space<vmem>>, vector<8x1xf32>,
      %c0_19 = arith.constant 0 : index
      %c0_20 = arith.constant 0 : index
      %36 = vector.load %arg9[%c0_19, %c0_20] : memref<8x1xf32, #tpu.memory_space<vmem>>, vector<8x1xf32>
      %37 = arith.mulf %27, %7 : vector<8x8xf32>
      %cst_21 = arith.constant dense<0.000000e+00> : vector<8xf32>
      %38 = vector.multi_reduction <add>, %37, %cst_21 [1] : vector<8x8xf32> to vector<8xf32>
      %39 = vector.shape_cast %38 : vector<8xf32> to vector<8x1xf32>
      %40 = arith.addf %36, %39 : vector<8x1xf32>
      %c0_22 = arith.constant 0 : index
      %c0_23 = arith.constant 0 : index
      %41 = vector.load %arg9[%c0_22, %c0_23] : memref<8x1xf32, #tpu.memory_space<vmem>>, vector<8x1xf32>
      tpu.vector_store %arg9[%c0_22, %c0_23], %40 {strides = array<i32>} : memref<8x1xf32, #tpu.memory_space<vmem>>, vector<8x1xf32>,
      %c0_24 = arith.constant 0 : index
      %c0_25 = arith.constant 0 : index
      %42 = vector.load %arg10[%c0_24, %c0_25] : memref<8x1xf32, #tpu.memory_space<vmem>>, vector<8x1xf32>
      %cst_26 = arith.constant dense<0.000000e+00> : vector<8xf32>
      %43 = vector.multi_reduction <add>, %27, %cst_26 [1] : vector<8x8xf32> to vector<8xf32>
      %44 = vector.shape_cast %43 : vector<8xf32> to vector<8x1xf32>
      %45 = arith.addf %42, %44 : vector<8x1xf32>
      %c0_27 = arith.constant 0 : index
      %c0_28 = arith.constant 0 : index
      %46 = vector.load %arg10[%c0_27, %c0_28] : memref<8x1xf32, #tpu.memory_space<vmem>>, vector<8x1xf32>
      tpu.vector_store %arg10[%c0_27, %c0_28], %45 {strides = array<i32>} : memref<8x1xf32, #tpu.memory_space<vmem>>, vector<8x1xf32>,
    } else {
    }
    %16 = arith.cmpi ne, %arg0, %arg1 : i32
    %17 = arith.extui %16 : i1 to i32
    %c0_i32_10 = arith.constant 0 : i32
    %18 = arith.cmpi ne, %17, %c0_i32_10 : i32
    scf.if %18 {
      %22 = arith.extui %12 : vector<8x8xi1> to vector<8x8xi32>
      %23 = arith.sitofp %22 : vector<8x8xi32> to vector<8x8xf32>
      %24 = math.exp %7 : vector<8x8xf32>
      %c0_13 = arith.constant 0 : index
      %c0_14 = arith.constant 0 : index
      %25 = vector.load %arg8[%c0_13, %c0_14] : memref<8x1xf32, #tpu.memory_space<vmem>>, vector<8x1xf32>
      %cst_15 = arith.constant dense<0.000000e+00> : vector<8xf32>
      %26 = vector.multi_reduction <add>, %24, %cst_15 [1] : vector<8x8xf32> to vector<8xf32>
      %27 = vector.shape_cast %26 : vector<8xf32> to vector<8x1xf32>
      %28 = arith.addf %25, %27 : vector<8x1xf32>
      %c0_16 = arith.constant 0 : index
      %c0_17 = arith.constant 0 : index
      %29 = vector.load %arg8[%c0_16, %c0_17] : memref<8x1xf32, #tpu.memory_space<vmem>>, vector<8x1xf32>
      tpu.vector_store %arg8[%c0_16, %c0_17], %28 {strides = array<i32>} : memref<8x1xf32, #tpu.memory_space<vmem>>, vector<8x1xf32>,
      %c0_18 = arith.constant 0 : index
      %c0_19 = arith.constant 0 : index
      %30 = vector.load %arg9[%c0_18, %c0_19] : memref<8x1xf32, #tpu.memory_space<vmem>>, vector<8x1xf32>
      %31 = arith.mulf %23, %7 : vector<8x8xf32>
      %cst_20 = arith.constant dense<0.000000e+00> : vector<8xf32>
      %32 = vector.multi_reduction <add>, %31, %cst_20 [1] : vector<8x8xf32> to vector<8xf32>
      %33 = vector.shape_cast %32 : vector<8xf32> to vector<8x1xf32>
      %34 = arith.addf %30, %33 : vector<8x1xf32>
      %c0_21 = arith.constant 0 : index
      %c0_22 = arith.constant 0 : index
      %35 = vector.load %arg9[%c0_21, %c0_22] : memref<8x1xf32, #tpu.memory_space<vmem>>, vector<8x1xf32>
      tpu.vector_store %arg9[%c0_21, %c0_22], %34 {strides = array<i32>} : memref<8x1xf32, #tpu.memory_space<vmem>>, vector<8x1xf32>,
      %c0_23 = arith.constant 0 : index
      %c0_24 = arith.constant 0 : index
      %36 = vector.load %arg10[%c0_23, %c0_24] : memref<8x1xf32, #tpu.memory_space<vmem>>, vector<8x1xf32>
      %cst_25 = arith.constant dense<0.000000e+00> : vector<8xf32>
      %37 = vector.multi_reduction <add>, %23, %cst_25 [1] : vector<8x8xf32> to vector<8xf32>
      %38 = vector.shape_cast %37 : vector<8xf32> to vector<8x1xf32>
      %39 = arith.addf %36, %38 : vector<8x1xf32>
      %c0_26 = arith.constant 0 : index
      %c0_27 = arith.constant 0 : index
      %40 = vector.load %arg10[%c0_26, %c0_27] : memref<8x1xf32, #tpu.memory_space<vmem>>, vector<8x1xf32>
      tpu.vector_store %arg10[%c0_26, %c0_27], %39 {strides = array<i32>} : memref<8x1xf32, #tpu.memory_space<vmem>>, vector<8x1xf32>,
    } else {
    }
    %c0_i32_11 = arith.constant 0 : i32
    %19 = arith.cmpi eq, %arg1, %c0_i32_11 : i32
    %20 = arith.extui %19 : i1 to i32
    %c0_i32_12 = arith.constant 0 : i32
    %21 = arith.cmpi ne, %20, %c0_i32_12 : i32
    scf.if %21 {
      %c0_13 = arith.constant 0 : index
      %c0_14 = arith.constant 0 : index
      %22 = vector.load %arg10[%c0_13, %c0_14] : memref<8x1xf32, #tpu.memory_space<vmem>>, vector<8x1xf32>
      %cst_15 = arith.constant 0.000000e+00 : f32
      %23 = vector.broadcast %cst_15 : f32 to vector<8x1xf32>
      %24 = arith.cmpf oeq, %22, %23 : vector<8x1xf32>
      %25 = arith.extui %24 : vector<8x1xi1> to vector<8x1xi32>
      %26 = arith.sitofp %25 : vector<8x1xi32> to vector<8x1xf32>
      %c0_16 = arith.constant 0 : index
      %c0_17 = arith.constant 0 : index
      %27 = vector.load %arg9[%c0_16, %c0_17] : memref<8x1xf32, #tpu.memory_space<vmem>>, vector<8x1xf32>
      %c0_18 = arith.constant 0 : index
      %c0_19 = arith.constant 0 : index
      %28 = vector.load %arg8[%c0_18, %c0_19] : memref<8x1xf32, #tpu.memory_space<vmem>>, vector<8x1xf32>
      %29 = math.log %28 : vector<8x1xf32>
      %30 = arith.mulf %22, %29 : vector<8x1xf32>
      %31 = arith.subf %27, %30 : vector<8x1xf32>
      %32 = arith.addf %22, %26 : vector<8x1xf32>
      %33 = arith.divf %31, %32 : vector<8x1xf32>
      %cst_20 = arith.constant 0.000000e+00 : f32
      %34 = vector.broadcast %cst_20 : f32 to vector<8x1xf32>
      %35 = arith.subf %34, %33 : vector<8x1xf32>
      %cst_21 = arith.constant 1.000000e+00 : f32
      %36 = vector.broadcast %cst_21 : f32 to vector<8x1xf32>
      %37 = arith.subf %36, %26 : vector<8x1xf32>
      %38 = arith.mulf %35, %37 : vector<8x1xf32>
      %c0_22 = arith.constant 0 : index
      %c0_23 = arith.constant 0 : index
      %39 = vector.load %arg6[%c0_22, %c0_23] : memref<8x1xf32, #tpu.memory_space<vmem>>, vector<8x1xf32>
      tpu.vector_store %arg6[%c0_22, %c0_23], %38 {strides = array<i32>} : memref<8x1xf32, #tpu.memory_space<vmem>>, vector<8x1xf32>,
      %c0_24 = arith.constant 0 : index
      %c0_25 = arith.constant 0 : index
      %40 = vector.load %arg7[%c0_24, %c0_25] : memref<8x1xf32, #tpu.memory_space<vmem>>, vector<8x1xf32>
      tpu.vector_store %arg7[%c0_24, %c0_25], %26 {strides = array<i32>} : memref<8x1xf32, #tpu.memory_space<vmem>>, vector<8x1xf32>,
    } else {
    }
    return
  }
  func.func @transform_0(%arg0: i32, %arg1: i32) -> (i32, i32) {
    %c0_i32 = arith.constant 0 : i32
    %c0_i32_0 = arith.constant 0 : i32
    return %arg0, %c0_i32 : i32, i32
  }
  func.func @transform_1(%arg0: i32, %arg1: i32) -> (i32, i32) {
    %c0_i32 = arith.constant 0 : i32
    %c0_i32_0 = arith.constant 0 : i32
    return %arg1, %c0_i32 : i32, i32
  }
  func.func @transform_2(%arg0: i32, %arg1: i32) -> (i32, i32) {
    %c0_i32 = arith.constant 0 : i32
    %c0_i32_0 = arith.constant 0 : i32
    return %arg0, %c0_i32 : i32, i32
  }
  func.func @transform_3(%arg0: i32, %arg1: i32) -> (i32, i32) {
    %c0_i32 = arith.constant 0 : i32
    %c0_i32_0 = arith.constant 0 : i32
    return %c0_i32, %arg1 : i32, i32
  }
  func.func @transform_4(%arg0: i32, %arg1: i32) -> (i32, i32) {
    %c0_i32 = arith.constant 0 : i32
    %c0_i32_0 = arith.constant 0 : i32
    return %arg0, %c0_i32 : i32, i32
  }
  func.func @transform_5(%arg0: i32, %arg1: i32) -> (i32, i32) {
    %c0_i32 = arith.constant 0 : i32
    %c0_i32_0 = arith.constant 0 : i32
    return %arg0, %c0_i32 : i32, i32
  }
}

</mosaic_0001>

<bundles_post_ra>
// kernel: tpu_custom_call.1
= control target key start
LH: loop header
LB: loop body
LE: loop exit
PB: predicated region body
PF: predicated region fallthrough
CT: control target
= control target key end

     0   :  { %11 = vsyncpa [#allocation6], 0  ;;  %s229_s21 = smov [#allocation5]   ;;  %s293_s0 = inlined_call_operand.vmem [shape: f32[8,32], index: 0, kind: input, shape index: {}]   ;;  %s294_s1 = inlined_call_operand.hbm [shape: f32[8,32], index: 1, kind: input, shape index: {}]   ;;  %s295_s2 = inlined_call_operand.vmem [shape: s32[8,1], index: 2, kind: input, shape index: {}]   ;;  %s296_s3 = inlined_call_operand.vmem [shape: s32[1,8], index: 3, kind: input, shape index: {}]   ;;  %s297_s4 = inlined_call_operand.vmem [shape: f32[8,1], index: 4, kind: output, shape index: {0}]   ;;  %s298_s5 = inlined_call_operand.vmem [shape: f32[8,1], index: 5, kind: output, shape index: {1}]  }
   0x1   :  { %s19_s20 = sshll.u32 %s294_s1, 4  ;;  %s21_s22 = sshll.u32 %s229_s21, 4  ;;  %s20_s20 = int_to_ptr.hbm [resolvable:$true] %s19_s20  ;;  %s22_s22 = int_to_ptr.vmem [resolvable:$true] %s21_s22 }
   0x2   :  { %24 = dma.hbm_to_vmem [thread:$0]  %s20_s20, 128, %s22_s22, [#allocation6]  }
   0x3   :  { %227 = dma.done.wait [#allocation6], 128  }
   0x4   :  { %228 = vsyncadd [#allocation6], 4294967168  ;;  %v230_v0 = vmov 0   ;;  %vm43_vm0 = vcmask 261120   ;;  %v71_v1 = vld [vmem:[%s295_s2] sm:$0xff]  ;;  %v42_v2 = vld [vmem:[#allocation5] sm:$0xff]  ;;  %v82_v4 = vlaneseq }
   0x5   :  { %195 = vset.pattern.permute.xlu0 %v230_v0  ;;  %187 = vmatpush.xpose.msk.msra.mxu0 %vm43_vm0, %v42_v2  ;;  %v41_v3 = vld [vmem:[%s293_s0] sm:$0xff]  ;;  %vm94_vm3 = vcmask 64512   ;;  %v231_v9 = vmov 0.0   ;;  %vm37_vm5 = vcmask 7168  }
   0x6   :  { %74 = vperm.xlu0 %195, %v71_v1   ;;  %v83_v5 = vshrl.u32 %v82_v4, 7  ;;  %v85_v6 = vand.u32 127, %v82_v4  ;;  %v196_v7 = vld [vmem:[%s296_s3] ss:$0 sm:$0xff]  ;;  %40 = vst.msk [vmem:[#allocation4] sm:$0xff] %vm37_vm5, %v231_v9 }
   0x7   :  { %38 = vst.msk [vmem:[#allocation2] sm:$0xff] %vm37_vm5, %v231_v9 }
   0x8   :  { %188 = vmatmul.msk.f32.vlgmr.msra.gmra.mxu0 %vm43_vm0, %v41_v3  ;;  %vm86_vm1 = vcmp.ne.s32.totalorder %v83_v5, %v85_v6  ;;  %39 = vst.msk [vmem:[#allocation3] sm:$0xff] %vm37_vm5, %v231_v9 }
   0xd   :  { %v108_v20 = vld [vmem:[#allocation4] sm:$0xff] }
   0xe   :  { %v93_v26 = vld [vmem:[#allocation2] sm:$0xff] }
   0xf   :  { %v101_v31 = vld [vmem:[#allocation3] sm:$0xff] }
  0x78   :  { %v75_v8 = vpop.permute.xlu0 %74 }
  0x79   :  { %vm77_vm2 = vcmp.eq.s32.totalorder %v75_v8, %v196_v7 }
  0x7a   :  { %vm87_vm4 = vmand %vm77_vm2, %vm86_vm1 }
  0x7b   :  { %v189_v10 = vsel %vm87_vm4, 1.0, %v231_v9 }
  0x7c   :  { %v109_v11 = vsel %vm94_vm3, %v189_v10, 0.0 }
  0x7d   :  { %110 = vadd.xlane.f32.xlu0 %v109_v11 }
  0x85   :  { %v67_v12 = vpop.f32.mrf.mxu0 }
  0x86   :  { %v70_v13 = vmul.f32 14.285714, %v67_v12 }
  0x88   :  { %v90_v14 = vmul.f32 1.442695, %v70_v13  ;;  %v102_v18 = vmul.f32 %v189_v10, %v70_v13 }
  0x8a   :  { %197 = vpow2.f32 %v90_v14  ;;  %v103_v19 = vsel %vm94_vm3, %v102_v18, 0.0 }
  0x90   :  { %v198_v15 = vpop.eup %197 }
  0x91   :  { %v92_v16 = vsel %vm86_vm1, %v198_v15, 0.0 }
  0x92   :  { %v95_v17 = vsel %vm94_vm3, %v92_v16, 0.0 }
  0x93   :  { %96 = vadd.xlane.f32.xlu1 %v95_v17 }
  0x9b   :  { %104 = vadd.xlane.f32.xlu1 %v103_v19 }
  0xf0   :  { %v111_v21 = vpop.xlane.xlu0 %110 }
  0xf1   :  { %v112_v22 = vadd.f32 %v111_v21, %v108_v20 }
  0xf3   :  { %113 = vst.msk [vmem:[#allocation4] sm:$0xff] %vm37_vm5, %v112_v22 }
  0xfa   :  { %v146_v23 = vld [vmem:[#allocation4] sm:$0xff] }
  0xfb   :  { %vm147_vm6 = vcmp.eq.f32.partialorder %v146_v23, 0.0 }
  0xfc   :  { %v191_v24 = vsel %vm147_vm6, 1.0, %v231_v9 }
  0xfd   :  { %177 = vst.msk [vmem:[%s298_s5] sm:$0xff] %vm37_vm5, %v191_v24  ;;  %v156_v25 = vadd.f32 %v191_v24, %v146_v23  ;;  %v173_v49 = vsub.f32 1.0, %v191_v24 }
  0xff   :  { %199 = vrcp.f32 %v156_v25  ;;  %vm162_vm7 = vweird.f32 %v156_v25  ;;  %v168_v37 = vand.u32 2147483648, %v156_v25  ;;  %v166_v39 = vand.u32 2147483647, %v156_v25 }
 0x101   :  { %v169_v42 = vor.u32 1.1754944e-38, %v168_v37  ;;  %vm167_vm10 = vcmp.eq.f32.partialorder %v166_v39, 8.507059e+37 }
 0x105   :  { %v200_v28 = vpop.eup %199 }
 0x106   :  { %v97_v27 = vpop.xlane.xlu1 %96  ;;  %v158_v30 = vmul.f32 %v200_v28, %v156_v25  ;;  %vm163_vm8 = vweird.f32 %v200_v28 }
 0x107   :  { %v98_v29 = vadd.f32 %v97_v27, %v93_v26  ;;  %vm164_vm9 = vmor %vm162_vm7, %vm163_vm8 }
 0x108   :  { %v159_v33 = vsub.f32 1.0, %v158_v30 }
 0x109   :  { %100 = vst.msk [vmem:[#allocation2] sm:$0xff] %vm37_vm5, %v98_v29 }
 0x10a   :  { %v160_v36 = vmul.f32 %v200_v28, %v159_v33 }
 0x10c   :  { %v161_v38 = vadd.f32 %v200_v28, %v160_v36 }
 0x10e   :  { %v105_v32 = vpop.xlane.xlu1 %104  ;;  %v165_v44 = vsel %vm164_vm9, %v200_v28, %v161_v38 }
 0x10f   :  { %v106_v34 = vadd.f32 %v105_v32, %v101_v31  ;;  %v170_v47 = vsel %vm167_vm10, %v169_v42, %v165_v44 }
 0x110   :  { %v151_v35 = vld [vmem:[#allocation2] sm:$0xff] }
 0x111   :  { %201 = vlog2.f32 %v151_v35  ;;  %107 = vst.msk [vmem:[#allocation3] sm:$0xff] %vm37_vm5, %v106_v34 }
 0x117   :  { %v202_v40 = vpop.eup %201 }
 0x118   :  { %v153_v41 = vmul.f32 0.6931472, %v202_v40  ;;  %v150_v45 = vld [vmem:[#allocation3] sm:$0xff] }
 0x11a   :  { %v154_v43 = vmul.f32 %v153_v41, %v146_v23 }
 0x11c   :  { %v155_v46 = vsub.f32 %v150_v45, %v154_v43 }
 0x11e   :  { %v171_v48 = vmul.f32 %v170_v47, %v155_v46 }
 0x120   :  { %v172_v50 = vsub.f32 0.0, %v171_v48 }
 0x122   :  { %v174_v51 = vmul.f32 %v173_v49, %v172_v50 }
 0x124   :  { %176 = vst.msk [vmem:[%s297_s4] sm:$0xff] %vm37_vm5, %v174_v51 }
 0x125   :  { %186 = vsyncpa [#allocation6], 1 }

</bundles_post_ra>
